<compile_context>
chip_gen: v5e
topology: v5e:2x2
jax: 0.10.0
libtpu: 0.0.40
codegen_flags: <defaults>
</compile_context>

<pallas_src>
import functools

import jax
import jax.numpy as jnp
from jax.experimental import pallas as pl
from jax.experimental.pallas import tpu as pltpu

_MIB = 1024 * 1024


def _vmem_budget():
    """Returns (physical_vmem_bytes, resident_budget_bytes), generation-aware."""
    phys = 128 * _MIB
    try:
        info = pltpu.get_tpu_info()
        phys = int(getattr(info, "vmem_capacity_bytes", phys)) or phys
    except Exception:
        pass
    # ~40 MiB resident budget on 64-MiB parts (v7x); 64 MiB on 128-MiB parts.
    budget = min(64 * _MIB, max(16 * _MIB, (phys * 5) // 8))
    return phys, budget


def _pick_s_tile(S, C, itemsize, w_bytes, budget, max_s_tile):
    """Largest spatial tile (multiple of 128, or full S) fitting the budget."""
    # Resident besides the streamed x tile: double-buffered weights, tiny
    # double-buffered output, two (1, C) f32 scratch rows (8-sublane padded),
    # plus slack for compiler-internal scratch.
    fixed = 2 * w_bytes + 4 * C * itemsize + 2 * 8 * max(C, 128) * 4 + 2 * _MIB
    per_128 = 2 * C * 128 * itemsize          # double-buffered 128-lane slab
    lanes_mult = max(1, (budget - fixed) // per_128)
    if max_s_tile is not None:
        lanes_mult = max(1, min(lanes_mult, max(1, max_s_tile // 128)))
    s_tile_cap = int(lanes_mult) * 128

    if S <= s_tile_cap:
        return S, False
    # Prefer a multiple of 128 that divides S exactly (no masking anywhere),
    # but never shrink the tile below half the cap for it.
    for m in range(int(lanes_mult), max(0, int(lanes_mult) // 2 - 1), -1):
        if S % (m * 128) == 0:
            return m * 128, False
    return s_tile_cap, (S % s_tile_cap) != 0


def _channel_attention_kernel(x_ref, w1_ref, w2_ref, o_ref, max_ref, sum_ref,
                              *, spatial_size, s_tile, needs_mask):
    # x_ref : (1, C, s_tile) block of the flattened input, native dtype
    # w1_ref: (C, Cr)  first 1x1 conv weight, transposed (VMEM-resident)
    # w2_ref: (Cr, C)  second 1x1 conv weight, transposed (VMEM-resident)
    # o_ref : (1, 1, C) lane-dense output block
    # max_ref / sum_ref: (1, C) f32 running max / running mean (sum * 1/S)
    s = pl.program_id(1)
    ns = pl.num_programs(1)
    inv_s = 1.0 / float(spatial_size)

    @pl.when(s == 0)
    def _init():
        max_ref[...] = jnp.full_like(max_ref, -jnp.inf)
        sum_ref[...] = jnp.zeros_like(sum_ref)

    x = x_ref[...]                                   # native dtype, no upcast

    def _accumulate(x_for_max, x_for_sum):
        tile_max = jnp.max(x_for_max, axis=-1).astype(jnp.float32)   # (1, C)
        tile_sum = jnp.sum(x_for_sum, axis=-1, dtype=jnp.float32)    # (1, C)
        max_ref[...] = jnp.maximum(max_ref[...], tile_max)
        sum_ref[...] = sum_ref[...] + tile_sum * inv_s

    if needs_mask:
        # Only the single, globally-last partial tile pays the mask.
        @pl.when(s < ns - 1)
        def _acc_full():
            _accumulate(x, x)

        @pl.when(s == ns - 1)
        def _acc_masked():
            lane = jax.lax.broadcasted_iota(jnp.int32, x.shape, 2)
            valid = (s * s_tile + lane) < spatial_size
            _accumulate(jnp.where(valid, x, jnp.full_like(x, -jnp.inf)),
                        jnp.where(valid, x, jnp.zeros_like(x)))
    else:
        _accumulate(x, x)

    @pl.when(s == ns - 1)
    def _finalize():
        # Native-dtype weights straight into the MXU; f32 accumulation.
        w1 = w1_ref[...]
        w2 = w2_ref[...]

        def se(p):                                   # p: (1, C) f32
            h = jnp.maximum(
                jnp.dot(p, w1, preferred_element_type=jnp.float32), 0.0)
            return jnp.dot(h, w2, preferred_element_type=jnp.float32)

        out = jax.nn.sigmoid(se(max_ref[...]) + se(sum_ref[...]))    # (1, C)
        o_ref[...] = out.reshape(o_ref.shape).astype(o_ref.dtype)


def _pooled_split_kernel(x_ref, omax_ref, osum_ref, max_ref, sum_ref,
                         *, spatial_size, s_tile, ns_total, needs_mask):
    # B == 1 path: leading "parallel" axis splits the spatial tile range so
    # both v7x TensorCores stream HBM.  Each split writes its partial
    # (max, sum/S) stats; the tiny combine + SE happens in the wrapper.
    c = pl.program_id(0)             # spatial split (sharded across cores)
    s = pl.program_id(1)             # tile index within this split
    ns_split = pl.num_programs(1)
    gt = c * ns_split + s            # global spatial-tile index
    inv_s = 1.0 / float(spatial_size)

    @pl.when(s == 0)
    def _init():
        max_ref[...] = jnp.full_like(max_ref, -jnp.inf)
        sum_ref[...] = jnp.zeros_like(sum_ref)

    x = x_ref[...]

    def _accumulate(x_for_max, x_for_sum):
        tile_max = jnp.max(x_for_max, axis=-1).astype(jnp.float32)
        tile_sum = jnp.sum(x_for_sum, axis=-1, dtype=jnp.float32)
        max_ref[...] = jnp.maximum(max_ref[...], tile_max)
        sum_ref[...] = sum_ref[...] + tile_sum * inv_s

    if needs_mask:
        @pl.when(gt < ns_total - 1)
        def _acc_full():
            _accumulate(x, x)

        @pl.when(gt == ns_total - 1)
        def _acc_masked():
            lane = jax.lax.broadcasted_iota(jnp.int32, x.shape, 2)
            valid = (gt * s_tile + lane) < spatial_size
            _accumulate(jnp.where(valid, x, jnp.full_like(x, -jnp.inf)),
                        jnp.where(valid, x, jnp.zeros_like(x)))
    else:
        @pl.when(gt < ns_total)      # skip ghost tiles past the end of S
        def _acc_full():
            _accumulate(x, x)

    @pl.when(s == ns_split - 1)
    def _finalize():
        omax_ref[...] = max_ref[...].reshape(omax_ref.shape)
        osum_ref[...] = sum_ref[...].reshape(osum_ref.shape)


def channel_attention(x_nchw, w1_oi, w2_oi, *, spatial_splits=None,
                      max_s_tile=None, vmem_limit_bytes=None):
    """ChannelAttention forward.

    x_nchw: (B, C, H, W) NCHW input (PyTorch convention), floating dtype.
    w1_oi:  (C//r, C)  first 1x1 conv weight with the trailing 1x1 squeezed.
    w2_oi:  (C, C//r)  second 1x1 conv weight.
    Returns (B, C, 1, 1), matching the PyTorch module's output.

    Note: on v7x (2 TensorCores) full throughput needs B >= 2 so the batch
    axis shards across cores; for B == 1 the kernel automatically splits the
    spatial reduction across a parallel axis instead (spatial_splits).
    """
    B, C, H, W = x_nchw.shape
    Cr, C_in = w1_oi.shape
    assert C_in == C and w2_oi.shape == (C, Cr)
    assert jnp.issubdtype(x_nchw.dtype, jnp.floating), (
        "channel_attention: masked max pooling uses -inf, so the input must "
        "be a floating dtype")
    S = H * W

    x_flat = x_nchw.reshape(B, C, S)
    w1_t = jnp.transpose(w1_oi)      # (C, Cr)
    w2_t = jnp.transpose(w2_oi)      # (Cr, C)

    itemsize = jnp.dtype(x_nchw.dtype).itemsize
    w_itemsize = jnp.dtype(w1_oi.dtype).itemsize
    w_bytes = 2 * C * Cr * w_itemsize

    phys, budget = _vmem_budget()
    s_tile, needs_mask = _pick_s_tile(S, C, itemsize, w_bytes, budget,
                                      max_s_tile)
    ns = (S + s_tile - 1) // s_tile

    resident = (2 * C * s_tile * itemsize + 2 * w_bytes + 4 * C * itemsize
                + 2 * 8 * max(C, 128) * 4)
    if vmem_limit_bytes is None:
        vmem_limit_bytes = int(min(phys, max(budget, resident + 4 * _MIB)))

    cost = pl.CostEstimate(
        flops=8 * B * C * Cr,              # two tiny SE matmuls per branch
        transcendentals=B * C,             # sigmoid
        bytes_accessed=B * C * S * itemsize + 2 * w_bytes + B * C * itemsize,
    )
    compiler_params = pltpu.CompilerParams(
        dimension_semantics=("parallel", "arbitrary"),
        vmem_limit_bytes=vmem_limit_bytes,
    )

    if spatial_splits is None:
        spatial_splits = 2 if B == 1 else 1
    use_split = (B == 1) and (int(spatial_splits) > 1) and (ns >= 2)

    if not use_split:
        kernel = functools.partial(
            _channel_attention_kernel,
            spatial_size=S, s_tile=s_tile, needs_mask=needs_mask)
        out = pl.pallas_call(
            kernel,
            out_shape=jax.ShapeDtypeStruct((B, 1, C), x_nchw.dtype),
            grid_spec=pltpu.PrefetchScalarGridSpec(
                num_scalar_prefetch=0,
                grid=(B, ns),
                in_specs=[
                    pl.BlockSpec((1, C, s_tile), lambda b, s: (b, 0, s)),
                    pl.BlockSpec((C, Cr), lambda b, s: (0, 0)),   # resident
                    pl.BlockSpec((Cr, C), lambda b, s: (0, 0)),   # resident
                ],
                out_specs=pl.BlockSpec((1, 1, C), lambda b, s: (b, 0, 0)),
                scratch_shapes=[pltpu.VMEM((1, C), jnp.float32),
                                pltpu.VMEM((1, C), jnp.float32)],
            ),
            compiler_params=compiler_params,
            cost_estimate=cost,
        )(x_flat, w1_t, w2_t)
        return out.reshape(B, C, 1, 1)

    # --- B == 1 spatial-split path (keeps both v7x TensorCores streaming) ---
    n_split = int(spatial_splits)
    ns_split = (ns + n_split - 1) // n_split
    kernel = functools.partial(
        _pooled_split_kernel,
        spatial_size=S, s_tile=s_tile, ns_total=ns, needs_mask=needs_mask)

    def x_map(c, s):
        # Clamp ghost tiles (past the end of S) to the last real tile; their
        # contribution is skipped inside the kernel.
        return (0, 0, jnp.minimum(c * ns_split + s, ns - 1))

    pooled_max, pooled_sum = pl.pallas_call(
        kernel,
        out_shape=(jax.ShapeDtypeStruct((n_split, 1, C), jnp.float32),
                   jax.ShapeDtypeStruct((n_split, 1, C), jnp.float32)),
        grid_spec=pltpu.PrefetchScalarGridSpec(
            num_scalar_prefetch=0,
            grid=(n_split, ns_split),
            in_specs=[pl.BlockSpec((1, C, s_tile), x_map)],
            out_specs=[pl.BlockSpec((1, 1, C), lambda c, s: (c, 0, 0)),
                       pl.BlockSpec((1, 1, C), lambda c, s: (c, 0, 0))],
            scratch_shapes=[pltpu.VMEM((1, C), jnp.float32),
                            pltpu.VMEM((1, C), jnp.float32)],
        ),
        compiler_params=compiler_params,
        cost_estimate=cost,
    )(x_flat)

    # Tiny cross-split combine + SE MLP + sigmoid on a (1, C) vector; kept in
    # plain JAX on purpose (negligible next to the streaming pass above).
    max_p = jnp.max(pooled_max[:, 0, :], axis=0, keepdims=True)     # (1, C)
    mean_p = jnp.sum(pooled_sum[:, 0, :], axis=0, keepdims=True)    # (1, C)

    def se(p):
        h = jnp.maximum(
            jnp.dot(p, w1_t, preferred_element_type=jnp.float32), 0.0)
        return jnp.dot(h, w2_t, preferred_element_type=jnp.float32)

    out = jax.nn.sigmoid(se(max_p) + se(mean_p)).astype(x_nchw.dtype)
    return out.reshape(B, C, 1, 1)


def channel_attention_ref(x_nchw, w1_oi, w2_oi):
    """Pure-JAX reference mirroring the PyTorch forward."""
    B, C, H, W = x_nchw.shape
    xf = x_nchw.reshape(B, C, H * W).astype(jnp.float32)
    max_p = jnp.max(xf, axis=-1)   # (B, C)
    avg_p = jnp.mean(xf, axis=-1)  # (B, C)

    def se(p):
        h = jnp.maximum(p @ w1_oi.T.astype(jnp.float32), 0.0)
        return h @ w2_oi.T.astype(jnp.float32)

    out = jax.nn.sigmoid(se(max_p) + se(avg_p))
    return out.reshape(B, C, 1, 1).astype(x_nchw.dtype)


if __name__ == "__main__":
    # Small deterministic shapes consistent with the module (C % reduction == 0).
    B, C, H, W = 2, 32, 16, 16
    reduction = 16
    Cr = C // reduction  # 2

    key = jax.random.PRNGKey(0)
    kx, k1, k2 = jax.random.split(key, 3)

    x = jax.random.normal(kx, (B, C, H, W), dtype=jnp.float32)
    # Conv2d(C, C//r, 1, bias=False).weight -> (Cr, C, 1, 1); 1x1 squeezed.
    w1 = 0.1 * jax.random.normal(k1, (Cr, C), dtype=jnp.float32)
    # Conv2d(C//r, C, 1, bias=False).weight -> (C, Cr, 1, 1); 1x1 squeezed.
    w2 = 0.1 * jax.random.normal(k2, (C, Cr), dtype=jnp.float32)

    # 1) Fused path, single spatial tile.
    out = jax.block_until_ready(channel_attention(x, w1, w2))
    ref = channel_attention_ref(x, w1, w2)
    assert out.shape == (B, C, 1, 1), out.shape
    assert jnp.allclose(out, ref, atol=1e-5, rtol=1e-5), "mismatch (fused)"

    # 2) Fused path with a tiled spatial reduction and masked partial last tile.
    x2 = jax.random.normal(kx, (B, C, 13, 13), dtype=jnp.float32)
    out2 = jax.block_until_ready(channel_attention(x2, w1, w2, max_s_tile=128))
    ref2 = channel_attention_ref(x2, w1, w2)
    assert jnp.allclose(out2, ref2, atol=1e-5, rtol=1e-5), "mismatch (tiled)"

    # 3) B == 1 spatial-split path (two-TensorCore streaming), exact tiles.
    x3 = jax.random.normal(kx, (1, C, 32, 32), dtype=jnp.float32)
    out3 = jax.block_until_ready(channel_attention(x3, w1, w2, max_s_tile=128))
    ref3 = channel_attention_ref(x3, w1, w2)
    assert jnp.allclose(out3, ref3, atol=1e-5, rtol=1e-5), "mismatch (split)"

    # 4) B == 1 spatial-split path with a masked partial last tile.
    x4 = jax.random.normal(kx, (1, C, 13, 13), dtype=jnp.float32)
    out4 = jax.block_until_ready(channel_attention(x4, w1, w2, max_s_tile=128))
    ref4 = channel_attention_ref(x4, w1, w2)
    assert jnp.allclose(out4, ref4, atol=1e-5, rtol=1e-5), "mismatch (split+mask)"

    print("KERNEL_OK")
</pallas_src>

<mosaic_0001>
module attributes {stable_mosaic.version = 11 : i64} {
  func.func @_channel_attention_kernel(%arg0: i32, %arg1: i32, %arg2: memref<1x32x256xf32, #tpu.memory_space<vmem>>, %arg3: memref<32x2xf32, #tpu.memory_space<vmem>>, %arg4: memref<2x32xf32, #tpu.memory_space<vmem>>, %arg5: memref<1x1x32xf32, #tpu.memory_space<vmem>>, %arg6: memref<1x32xf32, #tpu.memory_space<vmem>>, %arg7: memref<1x32xf32, #tpu.memory_space<vmem>>) attributes {dimension_semantics = [#tpu.dimension_semantics<parallel>, #tpu.dimension_semantics<arbitrary>], iteration_bounds = array<i64: 2, 1>, scalar_prefetch = 0 : i64, scratch_operands = 2 : i64, tpu.core_type = #tpu.core_type<tc>, window_params = [{transform_indices = @transform_0, window_bounds = array<i64: 1, 32, 256>}, {pipeline_mode = #tpu.pipeline_mode<synchronous>, transform_indices = @transform_1, window_bounds = array<i64: 32, 2>}, {pipeline_mode = #tpu.pipeline_mode<synchronous>, transform_indices = @transform_2, window_bounds = array<i64: 2, 32>}, {transform_indices = @transform_3, window_bounds = array<i64: 1, 1, 32>}]} {
    %c0_i32 = arith.constant 0 : i32
    %0 = arith.cmpi eq, %arg1, %c0_i32 : i32
    %1 = arith.extui %0 : i1 to i32
    %c0_i32_0 = arith.constant 0 : i32
    %2 = arith.cmpi ne, %1, %c0_i32_0 : i32
    scf.if %2 {
      %cst_15 = arith.constant 0xFF800000 : f32
      %17 = vector.broadcast %cst_15 : f32 to vector<1x32xf32>
      %c0_16 = arith.constant 0 : index
      %c0_17 = arith.constant 0 : index
      %18 = vector.load %arg6[%c0_16, %c0_17] : memref<1x32xf32, #tpu.memory_space<vmem>>, vector<1x32xf32>
      tpu.vector_store %arg6[%c0_16, %c0_17], %17 {strides = array<i32>} : memref<1x32xf32, #tpu.memory_space<vmem>>, vector<1x32xf32>,
      %cst_18 = arith.constant 0.000000e+00 : f32
      %19 = vector.broadcast %cst_18 : f32 to vector<1x32xf32>
      %c0_19 = arith.constant 0 : index
      %c0_20 = arith.constant 0 : index
      %20 = vector.load %arg7[%c0_19, %c0_20] : memref<1x32xf32, #tpu.memory_space<vmem>>, vector<1x32xf32>
      tpu.vector_store %arg7[%c0_19, %c0_20], %19 {strides = array<i32>} : memref<1x32xf32, #tpu.memory_space<vmem>>, vector<1x32xf32>,
    } else {
    }
    %c0 = arith.constant 0 : index
    %c0_1 = arith.constant 0 : index
    %c0_2 = arith.constant 0 : index
    %3 = vector.load %arg2[%c0, %c0_1, %c0_2] : memref<1x32x256xf32, #tpu.memory_space<vmem>>, vector<1x32x256xf32>
    %cst = arith.constant dense<0xFF800000> : vector<1x32xf32>
    %4 = vector.multi_reduction <maximumf>, %3, %cst [2] : vector<1x32x256xf32> to vector<1x32xf32>
    %cst_3 = arith.constant dense<0.000000e+00> : vector<1x32xf32>
    %5 = vector.multi_reduction <add>, %3, %cst_3 [2] : vector<1x32x256xf32> to vector<1x32xf32>
    %c0_4 = arith.constant 0 : index
    %c0_5 = arith.constant 0 : index
    %6 = vector.load %arg6[%c0_4, %c0_5] : memref<1x32xf32, #tpu.memory_space<vmem>>, vector<1x32xf32>
    %7 = arith.maximumf %6, %4 : vector<1x32xf32>
    %c0_6 = arith.constant 0 : index
    %c0_7 = arith.constant 0 : index
    %8 = vector.load %arg6[%c0_6, %c0_7] : memref<1x32xf32, #tpu.memory_space<vmem>>, vector<1x32xf32>
    tpu.vector_store %arg6[%c0_6, %c0_7], %7 {strides = array<i32>} : memref<1x32xf32, #tpu.memory_space<vmem>>, vector<1x32xf32>,
    %c0_8 = arith.constant 0 : index
    %c0_9 = arith.constant 0 : index
    %9 = vector.load %arg7[%c0_8, %c0_9] : memref<1x32xf32, #tpu.memory_space<vmem>>, vector<1x32xf32>
    %cst_10 = arith.constant 3.906250e-03 : f32
    %10 = vector.broadcast %cst_10 : f32 to vector<1x32xf32>
    %11 = arith.mulf %5, %10 : vector<1x32xf32>
    %12 = arith.addf %9, %11 : vector<1x32xf32>
    %c0_11 = arith.constant 0 : index
    %c0_12 = arith.constant 0 : index
    %13 = vector.load %arg7[%c0_11, %c0_12] : memref<1x32xf32, #tpu.memory_space<vmem>>, vector<1x32xf32>
    tpu.vector_store %arg7[%c0_11, %c0_12], %12 {strides = array<i32>} : memref<1x32xf32, #tpu.memory_space<vmem>>, vector<1x32xf32>,
    %c0_i32_13 = arith.constant 0 : i32
    %14 = arith.cmpi eq, %arg1, %c0_i32_13 : i32
    %15 = arith.extui %14 : i1 to i32
    %c0_i32_14 = arith.constant 0 : i32
    %16 = arith.cmpi ne, %15, %c0_i32_14 : i32
    scf.if %16 {
      %c0_15 = arith.constant 0 : index
      %c0_16 = arith.constant 0 : index
      %17 = vector.load %arg3[%c0_15, %c0_16] : memref<32x2xf32, #tpu.memory_space<vmem>>, vector<32x2xf32>
      %c0_17 = arith.constant 0 : index
      %c0_18 = arith.constant 0 : index
      %18 = vector.load %arg4[%c0_17, %c0_18] : memref<2x32xf32, #tpu.memory_space<vmem>>, vector<2x32xf32>
      %c0_19 = arith.constant 0 : index
      %c0_20 = arith.constant 0 : index
      %19 = vector.load %arg6[%c0_19, %c0_20] : memref<1x32xf32, #tpu.memory_space<vmem>>, vector<1x32xf32>
      %cst_21 = arith.constant dense<0.000000e+00> : vector<1x2xf32>
      %20 = tpu.matmul %19, %17, %cst_21 {dimension_numbers = #tpu.dot_dimension_numbers<[1], [0], [0], [1], [0, 0, 1, 1], [], []>} : vector<1x32xf32>, vector<32x2xf32>, vector<1x2xf32> -> vector<1x2xf32>
      %cst_22 = arith.constant 0.000000e+00 : f32
      %21 = vector.broadcast %cst_22 : f32 to vector<1x2xf32>
      %22 = arith.maximumf %20, %21 : vector<1x2xf32>
      %cst_23 = arith.constant dense<0.000000e+00> : vector<1x32xf32>
      %23 = tpu.matmul %22, %18, %cst_23 {dimension_numbers = #tpu.dot_dimension_numbers<[1], [0], [0], [1], [0, 0, 1, 1], [], []>} : vector<1x2xf32>, vector<2x32xf32>, vector<1x32xf32> -> vector<1x32xf32>
      %c0_24 = arith.constant 0 : index
      %c0_25 = arith.constant 0 : index
      %24 = vector.load %arg7[%c0_24, %c0_25] : memref<1x32xf32, #tpu.memory_space<vmem>>, vector<1x32xf32>
      %cst_26 = arith.constant dense<0.000000e+00> : vector<1x2xf32>
      %25 = tpu.matmul %24, %17, %cst_26 {dimension_numbers = #tpu.dot_dimension_numbers<[1], [0], [0], [1], [0, 0, 1, 1], [], []>} : vector<1x32xf32>, vector<32x2xf32>, vector<1x2xf32> -> vector<1x2xf32>
      %cst_27 = arith.constant 0.000000e+00 : f32
      %26 = vector.broadcast %cst_27 : f32 to vector<1x2xf32>
      %27 = arith.maximumf %25, %26 : vector<1x2xf32>
      %cst_28 = arith.constant dense<0.000000e+00> : vector<1x32xf32>
      %28 = tpu.matmul %27, %18, %cst_28 {dimension_numbers = #tpu.dot_dimension_numbers<[1], [0], [0], [1], [0, 0, 1, 1], [], []>} : vector<1x2xf32>, vector<2x32xf32>, vector<1x32xf32> -> vector<1x32xf32>
      %29 = arith.addf %23, %28 : vector<1x32xf32>
      %30 = arith.negf %29 : vector<1x32xf32>
      %31 = math.exp %30 : vector<1x32xf32>
      %cst_29 = arith.constant 1.000000e+00 : f32
      %32 = vector.broadcast %cst_29 : f32 to vector<1x32xf32>
      %33 = arith.addf %32, %31 : vector<1x32xf32>
      %34 = arith.divf %32, %33 : vector<1x32xf32>
      %35 = vector.shape_cast %34 : vector<1x32xf32> to vector<1x1x32xf32>
      %c0_30 = arith.constant 0 : index
      %c0_31 = arith.constant 0 : index
      %c0_32 = arith.constant 0 : index
      %36 = vector.load %arg5[%c0_30, %c0_31, %c0_32] : memref<1x1x32xf32, #tpu.memory_space<vmem>>, vector<1x1x32xf32>
      tpu.vector_store %arg5[%c0_30, %c0_31, %c0_32], %35 {strides = array<i32>} : memref<1x1x32xf32, #tpu.memory_space<vmem>>, vector<1x1x32xf32>,
    } else {
    }
    return
  }
  func.func @transform_0(%arg0: i32, %arg1: i32) -> (i32, i32, i32) {
    %c0_i32 = arith.constant 0 : i32
    %c0_i32_0 = arith.constant 0 : i32
    return %arg0, %c0_i32, %arg1 : i32, i32, i32
  }
  func.func @transform_1(%arg0: i32, %arg1: i32) -> (i32, i32) {
    %c0_i32 = arith.constant 0 : i32
    %c0_i32_0 = arith.constant 0 : i32
    %c0_i32_1 = arith.constant 0 : i32
    return %c0_i32, %c0_i32_0 : i32, i32
  }
  func.func @transform_2(%arg0: i32, %arg1: i32) -> (i32, i32) {
    %c0_i32 = arith.constant 0 : i32
    %c0_i32_0 = arith.constant 0 : i32
    %c0_i32_1 = arith.constant 0 : i32
    return %c0_i32, %c0_i32_0 : i32, i32
  }
  func.func @transform_3(%arg0: i32, %arg1: i32) -> (i32, i32, i32) {
    %c0_i32 = arith.constant 0 : i32
    %c0_i32_0 = arith.constant 0 : i32
    %c0_i32_1 = arith.constant 0 : i32
    return %arg0, %c0_i32, %c0_i32_0 : i32, i32, i32
  }
}

</mosaic_0001>

<bundles_post_ra>
// kernel: tpu_custom_call.1
= control target key start
LH: loop header
LB: loop body
LE: loop exit
PB: predicated region body
PF: predicated region fallthrough
CT: control target
= control target key end

     0   :  { %8 = vsyncpa [#allocation5], 0  ;;  %s1064_s0 = inlined_call_operand.hbm [shape: f32[2,32,256], index: 0, kind: input, shape index: {}]   ;;  %s1065_s1 = inlined_call_operand.vmem [shape: f32[32,2], index: 1, kind: input, shape index: {}]   ;;  %s1066_s2 = inlined_call_operand.vmem [shape: f32[2,32], index: 2, kind: input, shape index: {}]   ;;  %s1067_s3 = inlined_call_operand.hbm [shape: f32[2,1,32], index: 3, kind: output, shape index: {}]  }
   0x1   :  { %10 = vsyncpa [#allocation5 + $0x1], 0 }
   0x2   :  { %11 = vsyncpa [#allocation6], 0 }
   0x3   :  { %13 = vsyncpa [#allocation6 + $0x1], 0  ;;  %s915_s12 = smov 0   ;;  %s917_s13 = smov 0  }
   0x4   :  { %s919_s14 = smov 0   ;;  %s921_s15 = smov 0  }
   0x5   :  { %s923_s16 = smov 0   ;;  %s925_s17 = smov 0  }
   0x6 LB: > { %s683_s18 = sadd.s32 4294967295, %s888_s17   ;;  %s684_s19 = sadd.s32 4294967294, %s888_s17   ;;  %s888_s17 = sphi %s925_s17, %s19_s17   ;;  %s884_s16 = sphi %s923_s16, %s1076_s16   ;;  %s880_s15 = sphi %s921_s15, %s1075_s15   ;;  %s876_s14 = sphi %s919_s14, %s1074_s14   ;;  %s872_s13 = sphi %s917_s13, %s1073_s13   ;;  %s868_s12 = sphi %s915_s12, %s1072_s12  }
   0x7   : > { %s31_s20 = sadd.s32 1, %s884_s16  ;;  %s40_s21 = sadd.s32 1, %s876_s14 }
   0x8   : > { %p33_p0 = scmp.ge.s32.totalorder %s31_s20, 2  ;;  %p47_p1 = scmp.ne.s32.totalorder %s876_s14, %s872_s13 }
   0x9   : > { %p48_p2 = scmp.eq.s32.totalorder %s888_s17, 0  ;;  %p53_p3 = scmp.ne.s32.totalorder %s872_s13, %s868_s12 }
   0xa   : > { %s1078_s20 = smov (%p33_p0, %s31_s20), 0  ;;  %p54_p5 = scmp.eq.s32.totalorder %s683_s18, 0 }
   0xb   : > { %p956_p4 = por %p48_p2, %p47_p1  ;;  %s35_s23 = ssub.s32 %s884_s16, %s1078_s20 }
   0xc   : > { %p119_p6 = scmp.eq.s32.totalorder %s683_s18, 1  ;;  %p38_p7 = scmp.eq.s32.totalorder %s35_s23, 0 }
   0xd   : > { %p962_p8 = por %p54_p5, %p53_p3  ;;  %p125_p10 = scmp.eq.s32.totalorder %s684_s19, 1 }
   0xe   : > { %p966_p9 = por %p119_p6, %p47_p1  ;;  %p686_p12 = scmp.ge.s32.totalorder %s888_s17, 2 }
   0xf   : > { %s971_s26 = scalar_select %p38_p7, %s876_s14, %s40_s21  }
  0x10   : > { %p973_p11 = por %p125_p10, %p53_p3  ;;  %p714_p13 = scmp.lt.s32.totalorder %s888_s17, 2 }
  0x11   : > { %s151_s28 = sand.u32 1, %s876_s14   ;;  %s701_s30 = sshll.u32 %s884_s16, 6 }
  0x12   : > { %s687_s29 = sshll.u32 %s151_s28, 6  ;;  %s162_s6 = scalar_lea.hbm %s1064_s0, %s701_s30 }
  0x13   : > { %s155_s7 = scalar_lea.vmem [#allocation4], %s687_s29  ;;  %s163_s9 = sshll.u32 %s162_s6, 4  ;;  %s164_s9 = int_to_ptr.hbm [resolvable:$true] %s163_s9 }
  0x14   : > { %s165_s8 = sshll.u32 %s155_s7, 4  ;;  %p707_p0 = pnand %p714_p13, %p956_p4  ;;  %s166_s8 = int_to_ptr.vmem [resolvable:$true] %s165_s8 }
  0x15   : > { %p690_p1 = scmp.ge.s32.totalorder %s888_s17, 1  ;;  %s152_s10 = scalar_lea.sflag [#allocation5], %s151_s28 }
  0x16   : > { %s890_s11 = smov 256   ;;  %s891_s18 = smov 16  }
  0x17   : > { %709 = dma.hbm_to_vmem [thread:$0]  (!%p707_p0), %s164_s9, 1024, %s166_s8, %s152_s10, %s890_s11, %s890_s11, %s891_s18  }
  0x18   : > { %p173_p2 = scmp.lt.s32.totalorder %s888_s17, 3 }
  0x1a   : > { %p174_p3 = pnand %p690_p1, %p173_p2 }
  0x1b   : > { %s989_s19 = sand.u32 (!%p174_p3), 1, %s872_s13  }
  0x1c   : > { %177 = sbr.rel (%p174_p3) target bundleno = 696 (0x2b8), region = 32  ;;  %s691_s21 = sshll.u32 (!%p174_p3), %s989_s19, 6 }
  0x1d   : > { %s180_s23 = scalar_lea.sflag (!%p174_p3), [#allocation5], %s989_s19  ;;  %s183_s29 = scalar_lea.vmem (!%p174_p3), [#allocation4], %s691_s21 }
  0x21   : > { %859 = dma.done.wait (%p962_p8), %s180_s23, 1024  }
  0x22   : > { %861 = vsyncadd (%p962_p8), %s180_s23, 4294966272  ;;  %v214_v0 = vld [vmem:[%s183_s29] sm:$0xff]  ;;  %v215_v1 = vld [vmem:[%s183_s29 + $0x8] sm:$0xff]  ;;  %v892_v16 = vmov 0   ;;  %vm211_vm0 = vcmask 253952   ;;  %vm343_vm1 = vcmask 130112   ;;  %s602_s18 = scalar_lea.hbm %s1067_s3, %s880_s15 }
  0x23   : > { %v222_v2 = vmax.f32 %v214_v0, %v215_v1  ;;  %v218_v3 = vld [vmem:[%s183_s29 + $0x20] sm:$0xff]  ;;  %v219_v4 = vld [vmem:[%s183_s29 + $0x28] sm:$0xff]  ;;  %v234_v5 = vadd.f32 %v215_v1, %v214_v0  ;;  %v216_v7 = vld [vmem:[%s183_s29 + $0x10] sm:$0xff]  ;;  %769 = vset.pattern.permute.xlu2 %v892_v16  ;;  %770 = vset.pattern.permute.xlu0 %v892_v16  ;;  %vm347_vm2 = vcmask 195712   ;;  %vm351_vm3 = vcmask 261312   ;;  %s205_s21 = scalar_lea.vmem [#allocation7], %s989_s19 }
  0x24   : > { %v228_v6 = vmax.f32 %v218_v3, %v219_v4  ;;  %v217_v8 = vld [vmem:[%s183_s29 + $0x18] sm:$0xff]  ;;  %v220_v9 = vld [vmem:[%s183_s29 + $0x30] sm:$0xff]  ;;  %v240_v14 = vadd.f32 %v219_v4, %v218_v3  ;;  %771 = vset.pattern.permute.xlu1 %v892_v16  ;;  %vm472_vm4 = vcmask 261120   ;;  %vm526_vm5 = vcmask 1041408   ;;  %s604_s23 = sshll.u32 %s205_s21, 4  ;;  %s594_s15 = scalar_lea.sflag [#allocation6], %s989_s19  ;;  %s605_s23 = int_to_ptr.vmem [resolvable:$true] %s604_s23 }
  0x25   : > { %223 = vmax.xlane.f32.xlu0 %v222_v2  ;;  %235 = vadd.xlane.f32.xlu2 %v234_v5  ;;  %v221_v10 = vld [vmem:[%s183_s29 + $0x38] sm:$0xff]  ;;  %v225_v11 = vmax.f32 %v216_v7, %v217_v8  ;;  %v237_v12 = vadd.f32 %v217_v8, %v216_v7  ;;  %vm522_vm6 = vcmask 15360   ;;  %s606_s29 = sshll.u32 %s602_s18, 4  ;;  %s826_s4 = scalar_lea.hbm %s1067_s3, 2  ;;  %s607_s29 = int_to_ptr.hbm [resolvable:$true] %s606_s29 }
  0x26   : > { %229 = vmax.xlane.f32.xlu1 %v228_v6  ;;  %v231_v13 = vmax.f32 %v220_v9, %v221_v10  ;;  %v243_v15 = vadd.f32 %v221_v10, %v220_v9  ;;  %s820_s22 = sshra.s32 %s607_s29, 4  ;;  %s821_s22 = int_to_ptr.hbm [resolvable:$true] %s820_s22 }
  0x27   : > { %s822_s24 = scalar_lea.hbm %s821_s22, 1  ;;  %p827_p7 = scmp.lt.s32.totalorder %s821_s22, %s1067_s3 }
  0x28   : > { %p823_p4 = scmp.ne.s32.totalorder %s821_s22, %s822_s24  ;;  %p828_p8 = scmp.lt.s32.totalorder %s826_s4, %s822_s24 }
  0x2a   : > { %p824_p5 = pnand %p823_p4, %p966_p9  ;;  %p829_p10 = por %p828_p8, %p827_p7 }
  0x2c   : > { %p825_p6 = pneg %p824_p5 }
  0x2d   : > { %226 = vmax.xlane.f32.xlu0 %v225_v11  ;;  %238 = vadd.xlane.f32.xlu2 %v237_v12 }
  0x2e   : > { %232 = vmax.xlane.f32.xlu1 %v231_v13  ;;  %p830_p13 = pnand %p829_p10, %p825_p6 }
  0x35   : > { %241 = vadd.xlane.f32.xlu0 %v240_v14 }
  0x36   : > { %244 = vadd.xlane.f32.xlu1 %v243_v15 }
  0x98   : > { %v224_v17 = vpop.xlane.xlu0 %223  ;;  %v236_v56 = vpop.xlane.xlu2 %235 }
  0x99   : > { %v251_v18 = vperm.slane %v224_v17, 0  ;;  %v252_v19 = vperm.slane %v224_v17, 1  ;;  %v253_v20 = vperm.slane %v224_v17, 2  ;;  %v254_v21 = vperm.slane %v224_v17, 3  ;;  %v230_v36 = vpop.xlane.xlu1 %229 }
  0x9a   : > { %v255_v22 = vperm.slane %v224_v17, 4  ;;  %v256_v23 = vperm.slane %v224_v17, 5  ;;  %v257_v24 = vperm.slane %v224_v17, 6  ;;  %v258_v25 = vperm.slane %v224_v17, 7 }
  0x9b   : > { %283 = vst [vmem:[#allocation1] ss:$9 sm:$0xff] %v251_v18  ;;  %v267_v37 = vperm.slane %v230_v36, 0  ;;  %v268_v38 = vperm.slane %v230_v36, 1  ;;  %v269_v39 = vperm.slane %v230_v36, 2  ;;  %v270_v41 = vperm.slane %v230_v36, 3 }
  0x9c   : > { %285 = vst [vmem:[#allocation1 + $0x1] ss:$9 sm:$0xff] %v252_v19  ;;  %v271_v42 = vperm.slane %v230_v36, 4  ;;  %v272_v43 = vperm.slane %v230_v36, 5  ;;  %v273_v44 = vperm.slane %v230_v36, 6  ;;  %v274_v45 = vperm.slane %v230_v36, 7 }
  0x9d   : > { %287 = vst [vmem:[#allocation1 + $0x2] ss:$9 sm:$0xff] %v253_v20  ;;  %v358_v57 = vmul.f32 0.00390625, %v236_v56 }
  0x9e   : > { %289 = vst [vmem:[#allocation1 + $0x3] ss:$9 sm:$0xff] %v254_v21 }
  0x9f   : > { %291 = vst [vmem:[#allocation1 + $0x4] ss:$9 sm:$0xff] %v255_v22  ;;  %v366_v58 = vperm.slane %v358_v57, 0  ;;  %v367_v59 = vperm.slane %v358_v57, 1  ;;  %v368_v60 = vperm.slane %v358_v57, 2  ;;  %v369_v62 = vperm.slane %v358_v57, 3 }
  0xa0   : > { %293 = vst [vmem:[#allocation1 + $0x5] ss:$9 sm:$0xff] %v256_v23  ;;  %v227_v26 = vpop.xlane.xlu0 %226  ;;  %v370_v63 = vperm.slane %v358_v57, 4  ;;  %v371_v0 = vperm.slane %v358_v57, 5  ;;  %v372_v1 = vperm.slane %v358_v57, 6  ;;  %v373_v2 = vperm.slane %v358_v57, 7  ;;  %v239_v3 = vpop.xlane.xlu2 %238 }
  0xa1   : > { %295 = vst [vmem:[#allocation1 + $0x6] ss:$9 sm:$0xff] %v257_v24  ;;  %v259_v27 = vperm.slane %v227_v26, 0  ;;  %v260_v28 = vperm.slane %v227_v26, 1  ;;  %v261_v29 = vperm.slane %v227_v26, 2  ;;  %v262_v31 = vperm.slane %v227_v26, 3  ;;  %v233_v46 = vpop.xlane.xlu1 %232 }
  0xa2   : > { %297 = vst [vmem:[#allocation1 + $0x7] ss:$9 sm:$0xff] %v258_v25  ;;  %v263_v32 = vperm.slane %v227_v26, 4  ;;  %v264_v33 = vperm.slane %v227_v26, 5  ;;  %v265_v34 = vperm.slane %v227_v26, 6  ;;  %v266_v35 = vperm.slane %v227_v26, 7 }
  0xa3   : > { %v275_v47 = vperm.slane %v233_v46, 0  ;;  %v276_v48 = vperm.slane %v233_v46, 1  ;;  %v277_v49 = vperm.slane %v233_v46, 2  ;;  %v278_v51 = vperm.slane %v233_v46, 3 }
  0xa4   : > { %v279_v52 = vperm.slane %v233_v46, 4  ;;  %v280_v53 = vperm.slane %v233_v46, 5  ;;  %v281_v54 = vperm.slane %v233_v46, 6  ;;  %v282_v55 = vperm.slane %v233_v46, 7 }
  0xa5   : > { %v359_v4 = vmul.f32 0.00390625, %v239_v3 }
  0xa7   : > { %v374_v5 = vperm.slane %v359_v4, 0  ;;  %v375_v6 = vperm.slane %v359_v4, 1  ;;  %v376_v7 = vperm.slane %v359_v4, 2  ;;  %v377_v9 = vperm.slane %v359_v4, 3 }
  0xa8   : > { %v378_v10 = vperm.slane %v359_v4, 4  ;;  %v379_v11 = vperm.slane %v359_v4, 5  ;;  %v380_v12 = vperm.slane %v359_v4, 6  ;;  %v381_v13 = vperm.slane %v359_v4, 7  ;;  %v242_v14 = vpop.xlane.xlu0 %241 }
  0xa9   : > { %v298_v30 = vld [vmem:[#allocation1] sm:$0xff]  ;;  %v360_v15 = vmul.f32 0.00390625, %v242_v14  ;;  %v245_v25 = vpop.xlane.xlu1 %244 }
  0xaa   : > { %299 = vst [vmem:[#allocation1] ss:$9 sm:$0xff] %v259_v27  ;;  %327 = vperm.xlu2 %769, %v298_v30   ;;  %v361_v26 = vmul.f32 0.00390625, %v245_v25 }
  0xab   : > { %300 = vst [vmem:[#allocation1 + $0x1] ss:$9 sm:$0xff] %v260_v28  ;;  %v382_v16 = vperm.slane %v360_v15, 0  ;;  %v383_v17 = vperm.slane %v360_v15, 1  ;;  %v384_v18 = vperm.slane %v360_v15, 2  ;;  %v385_v19 = vperm.slane %v360_v15, 3 }
  0xac   : > { %301 = vst [vmem:[#allocation1 + $0x2] ss:$9 sm:$0xff] %v261_v29  ;;  %v386_v21 = vperm.slane %v360_v15, 4  ;;  %v387_v22 = vperm.slane %v360_v15, 5  ;;  %v388_v23 = vperm.slane %v360_v15, 6  ;;  %v389_v24 = vperm.slane %v360_v15, 7 }
  0xad   : > { %302 = vst [vmem:[#allocation1 + $0x3] ss:$9 sm:$0xff] %v262_v31  ;;  %v390_v27 = vperm.slane %v361_v26, 0  ;;  %v391_v28 = vperm.slane %v361_v26, 1  ;;  %v392_v29 = vperm.slane %v361_v26, 2  ;;  %v393_v30 = vperm.slane %v361_v26, 3 }
  0xae   : > { %303 = vst [vmem:[#allocation1 + $0x4] ss:$9 sm:$0xff] %v263_v32  ;;  %v394_v32 = vperm.slane %v361_v26, 4 }
  0xaf   : > { %304 = vst [vmem:[#allocation1 + $0x5] ss:$9 sm:$0xff] %v264_v33  ;;  %v395_v33 = vperm.slane %v361_v26, 5 }
  0xb0   : > { %305 = vst [vmem:[#allocation1 + $0x6] ss:$9 sm:$0xff] %v265_v34  ;;  %v396_v34 = vperm.slane %v361_v26, 6 }
  0xb1   : > { %306 = vst [vmem:[#allocation1 + $0x7] ss:$9 sm:$0xff] %v266_v35  ;;  %v397_v35 = vperm.slane %v361_v26, 7 }
  0xb8   : > { %v307_v40 = vld [vmem:[#allocation1] sm:$0xff] }
  0xb9   : > { %308 = vst [vmem:[#allocation1] ss:$9 sm:$0xff] %v267_v37  ;;  %330 = vperm.xlu0 %770, %v307_v40   ;;  %v893_v37 = vmov -inf  }
  0xba   : > { %309 = vst [vmem:[#allocation1 + $0x1] ss:$9 sm:$0xff] %v268_v38  ;;  %v469_v38 = vld [vmem:[%s1065_s1 + $0x18] sm:$0xff] }
  0xbb   : > { %310 = vst [vmem:[#allocation1 + $0x2] ss:$9 sm:$0xff] %v269_v39  ;;  %v468_v39 = vld [vmem:[%s1065_s1 + $0x10] sm:$0xff]  ;;  %488 = vmatpush.msra.mxu0 %v469_v38  ;;  %513 = vmatpush.msra.mxu1 %v469_v38 }
  0xbc   : > { %311 = vst [vmem:[#allocation1 + $0x3] ss:$9 sm:$0xff] %v270_v41  ;;  %v467_v41 = vld [vmem:[%s1065_s1 + $0x8] sm:$0xff] }
  0xbd   : > { %312 = vst [vmem:[#allocation1 + $0x4] ss:$9 sm:$0xff] %v271_v42  ;;  %489 = vmatpush.msra.mxu0 %v468_v39  ;;  %514 = vmatpush.msra.mxu1 %v468_v39  ;;  %v466_v42 = vld [vmem:[%s1065_s1] sm:$0xff] }
  0xbe   : > { %313 = vst [vmem:[#allocation1 + $0x5] ss:$9 sm:$0xff] %v272_v43 }
  0xbf   : > { %314 = vst [vmem:[#allocation1 + $0x6] ss:$9 sm:$0xff] %v273_v44  ;;  %490 = vmatpush.msra.mxu0 %v467_v41  ;;  %515 = vmatpush.msra.mxu1 %v467_v41  ;;  %v338_v44 = vlaneseq }
  0xc0   : > { %315 = vst [vmem:[#allocation1 + $0x7] ss:$9 sm:$0xff] %v274_v45 }
  0xc1   : > { %212 = vst.msk [vmem:[#allocation2] sm:$0x1] %vm211_vm0, %v893_v37  ;;  %491 = vmatpush.msra.mxu0 %v466_v42  ;;  %516 = vmatpush.msra.mxu1 %v466_v42  ;;  %v339_v45 = vand.u32 127, %v338_v44 }
  0xc3   : > { %v341_v46 = vadd.s32 4294967288, %v339_v45 }
  0xc7   : > { %v316_v50 = vld [vmem:[#allocation1] sm:$0xff] }
  0xc8   : > { %317 = vst [vmem:[#allocation1] ss:$9 sm:$0xff] %v275_v47  ;;  %333 = vperm.xlu2 %769, %v316_v50   ;;  %v345_v50 = vadd.s32 4294967280, %v339_v45  ;;  %v246_v56 = vld [vmem:[#allocation2] sm:$0x1] }
  0xc9   : > { %318 = vst [vmem:[#allocation1 + $0x1] ss:$9 sm:$0xff] %v276_v48 }
  0xca   : > { %319 = vst [vmem:[#allocation1 + $0x2] ss:$9 sm:$0xff] %v277_v49 }
  0xcb   : > { %320 = vst [vmem:[#allocation1 + $0x3] ss:$9 sm:$0xff] %v278_v51 }
  0xcc   : > { %321 = vst [vmem:[#allocation1 + $0x4] ss:$9 sm:$0xff] %v279_v52  ;;  %v349_v52 = vadd.s32 4294967272, %v339_v45 }
  0xcd   : > { %322 = vst [vmem:[#allocation1 + $0x5] ss:$9 sm:$0xff] %v280_v53 }
  0xce   : > { %323 = vst [vmem:[#allocation1 + $0x6] ss:$9 sm:$0xff] %v281_v54 }
  0xcf   : > { %324 = vst [vmem:[#allocation1 + $0x7] ss:$9 sm:$0xff] %v282_v55 }
  0xd6   : > { %v325_v61 = vld [vmem:[#allocation1] sm:$0xff] }
  0xd7   : > { %398 = vst [vmem:[#allocation1] ss:$9 sm:$0xff] %v366_v58 }
  0xd8   : > { %400 = vst [vmem:[#allocation1 + $0x1] ss:$9 sm:$0xff] %v367_v59 }
  0xd9   : > { %402 = vst [vmem:[#allocation1 + $0x2] ss:$9 sm:$0xff] %v368_v60  ;;  %v894_v60 = vmov 0.0  }
  0xda   : > { %404 = vst [vmem:[#allocation1 + $0x3] ss:$9 sm:$0xff] %v369_v62 }
  0xdb   : > { %406 = vst [vmem:[#allocation1 + $0x4] ss:$9 sm:$0xff] %v370_v63 }
  0xdc   : > { %408 = vst [vmem:[#allocation1 + $0x5] ss:$9 sm:$0xff] %v371_v0 }
  0xdd   : > { %410 = vst [vmem:[#allocation1 + $0x6] ss:$9 sm:$0xff] %v372_v1 }
  0xde   : > { %412 = vst [vmem:[#allocation1 + $0x7] ss:$9 sm:$0xff] %v373_v2 }
  0xdf   : > { %213 = vst.msk [vmem:[#allocation3] sm:$0x1] %vm211_vm0, %v894_v60 }
  0xe5   : > { %v413_v8 = vld [vmem:[#allocation1] sm:$0xff] }
  0xe6   : > { %414 = vst [vmem:[#allocation1] ss:$9 sm:$0xff] %v374_v5  ;;  %442 = vperm.xlu1 %771, %v413_v8  }
  0xe7   : > { %415 = vst [vmem:[#allocation1 + $0x1] ss:$9 sm:$0xff] %v375_v6  ;;  %v357_v6 = vld [vmem:[#allocation3] sm:$0x1] }
  0xe8   : > { %416 = vst [vmem:[#allocation1 + $0x2] ss:$9 sm:$0xff] %v376_v7 }
  0xe9   : > { %417 = vst [vmem:[#allocation1 + $0x3] ss:$9 sm:$0xff] %v377_v9 }
  0xea   : > { %418 = vst [vmem:[#allocation1 + $0x4] ss:$9 sm:$0xff] %v378_v10 }
  0xeb   : > { %419 = vst [vmem:[#allocation1 + $0x5] ss:$9 sm:$0xff] %v379_v11 }
  0xec   : > { %420 = vst [vmem:[#allocation1 + $0x6] ss:$9 sm:$0xff] %v380_v12  ;;  %v470_v12 = vld [vmem:[%s1066_s2] sm:$0x3] }
  0xed   : > { %421 = vst [vmem:[#allocation1 + $0x7] ss:$9 sm:$0xff] %v381_v13  ;;  %696 = vmatpush.msk.msra.mxu3 %vm526_vm5, %v470_v12  ;;  %694 = vmatpush.msk.msra.mxu2 %vm526_vm5, %v470_v12 }
  0xf4   : > { %v422_v20 = vld [vmem:[#allocation1] sm:$0xff] }
  0xf5   : > { %445 = vperm.xlu2 %769, %v422_v20   ;;  %423 = vst [vmem:[#allocation1] ss:$9 sm:$0xff] %v382_v16 }
  0xf6   : > { %424 = vst [vmem:[#allocation1 + $0x1] ss:$9 sm:$0xff] %v383_v17 }
  0xf7   : > { %425 = vst [vmem:[#allocation1 + $0x2] ss:$9 sm:$0xff] %v384_v18 }
  0xf8   : > { %426 = vst [vmem:[#allocation1 + $0x3] ss:$9 sm:$0xff] %v385_v19 }
  0xf9   : > { %427 = vst [vmem:[#allocation1 + $0x4] ss:$9 sm:$0xff] %v386_v21 }
  0xfa   : > { %428 = vst [vmem:[#allocation1 + $0x5] ss:$9 sm:$0xff] %v387_v22 }
  0xfb   : > { %429 = vst [vmem:[#allocation1 + $0x6] ss:$9 sm:$0xff] %v388_v23 }
  0xfc   : > { %430 = vst [vmem:[#allocation1 + $0x7] ss:$9 sm:$0xff] %v389_v24 }
  0xfd   : > { %336 = vperm.xlu2 %769, %v325_v61  }
 0x103   : > { %v431_v31 = vld [vmem:[#allocation1] sm:$0xff] }
 0x104   : > { %448 = vperm.xlu1 %771, %v431_v31   ;;  %432 = vst [vmem:[#allocation1] ss:$9 sm:$0xff] %v390_v27  ;;  %v328_v40 = vpop.permute.xlu2 %327 }
 0x105   : > { %433 = vst [vmem:[#allocation1 + $0x1] ss:$9 sm:$0xff] %v391_v28  ;;  %v340_v51 = vperm.slane %v328_v40, %v339_v45 }
 0x106   : > { %434 = vst [vmem:[#allocation1 + $0x2] ss:$9 sm:$0xff] %v392_v29 }
 0x107   : > { %435 = vst [vmem:[#allocation1 + $0x3] ss:$9 sm:$0xff] %v393_v30 }
 0x108   : > { %436 = vst [vmem:[#allocation1 + $0x4] ss:$9 sm:$0xff] %v394_v32 }
 0x109   : > { %437 = vst [vmem:[#allocation1 + $0x5] ss:$9 sm:$0xff] %v395_v33 }
 0x10a   : > { %438 = vst [vmem:[#allocation1 + $0x6] ss:$9 sm:$0xff] %v396_v34 }
 0x10b   : > { %439 = vst [vmem:[#allocation1 + $0x7] ss:$9 sm:$0xff] %v397_v35 }
 0x112   : > { %v440_v36 = vld [vmem:[#allocation1] sm:$0xff] }
 0x113   : > { %451 = vperm.xlu1 %771, %v440_v36  }
 0x122   : > { %v334_v43 = vpop.permute.xlu2 %333 }
 0x123   : > { %v346_v54 = vperm.slane %v334_v43, %v345_v50 }
 0x12b   : > { %v331_v47 = vpop.permute.xlu0 %330 }
 0x12c   : > { %v342_v49 = vperm.slane %v331_v47, %v341_v46 }
 0x12e   : > { %v344_v53 = vsel %vm343_vm1, %v342_v49, %v340_v51 }
 0x12f   : > { %v348_v58 = vsel %vm347_vm2, %v346_v54, %v344_v53 }
 0x14f   : > { %v446_v48 = vpop.permute.xlu2 %445 }
 0x150   : > { %v454_v3 = vperm.slane %v446_v48, %v341_v46 }
 0x157   : > { %v337_v55 = vpop.permute.xlu2 %336 }
 0x158   : > { %v350_v57 = vperm.slane %v337_v55, %v349_v52  ;;  %v443_v63 = vpop.permute.xlu1 %442 }
 0x159   : > { %v453_v1 = vperm.slane %v443_v63, %v339_v45 }
 0x15a   : > { %v352_v59 = vsel %vm351_vm3, %v350_v57, %v348_v58 }
 0x15b   : > { %v354_v61 = vmax.f32 %v246_v56, %v352_v59  ;;  %v455_v5 = vsel %vm343_vm1, %v454_v3, %v453_v1 }
 0x15d   : > { %356 = vst.msk [vmem:[#allocation2] sm:$0x1] %vm211_vm0, %v354_v61 }
 0x164   : > { %v471_v62 = vld [vmem:[#allocation2] sm:$0x1] }
 0x165   : > { %692 = vmatmul.msk.f32.vlgmr.msra.gmra.mxu0 %vm472_vm4, %v471_v62 }
 0x176   : > { %v449_v0 = vpop.permute.xlu1 %448 }
 0x177   : > { %v456_v2 = vperm.slane %v449_v0, %v345_v50 }
 0x179   : > { %v457_v8 = vsel %vm347_vm2, %v456_v2, %v455_v5 }
 0x185   : > { %v452_v4 = vpop.permute.xlu1 %451 }
 0x186   : > { %v458_v7 = vperm.slane %v452_v4, %v349_v52 }
 0x188   : > { %v459_v9 = vsel %vm351_vm3, %v458_v7, %v457_v8 }
 0x189   : > { %v461_v10 = vadd.f32 %v459_v9, %v357_v6 }
 0x18b   : > { %462 = vst.msk [vmem:[#allocation3] sm:$0x1] %vm211_vm0, %v461_v10 }
 0x192   : > { %v497_v11 = vld [vmem:[#allocation3] sm:$0x1] }
 0x193   : > { %693 = vmatmul.msk.f32.vlgmr.msra.gmra.mxu1 %vm472_vm4, %v497_v11 }
 0x1e2   : > { %v493_v13 = vpop.f32.mrf.mxu0 }
 0x1e3   : > { %v496_v14 = vmax.f32 %v493_v13, 0.0 }
 0x1e5   : > { %697 = vmatmul.msk.f32.vlgmr.msra.gmra.mxu3 %vm522_vm6, %v496_v14 }
 0x210   : > { %v518_v15 = vpop.f32.mrf.mxu1 }
 0x211   : > { %v521_v16 = vmax.f32 %v518_v15, 0.0 }
 0x213   : > { %695 = vmatmul.msk.f32.vlgmr.msra.gmra.mxu2 %vm522_vm6, %v521_v16 }
 0x268   : > { %v570_v17 = vpop.f32.mrf.mxu3 }
 0x296   : > { %v547_v18 = vpop.f32.mrf.mxu2 }
 0x297   : > { %v571_v19 = vadd.f32 %v570_v17, %v547_v18 }
 0x299   : > { %v698_v20 = vmul.f32 -1.442695, %v571_v19 }
 0x29b   : > { %772 = vpow2.f32 %v698_v20 }
 0x2a1   : > { %v773_v21 = vpop.eup %772 }
 0x2a2   : > { %v576_v22 = vadd.f32 1.0, %v773_v21 }
 0x2a4   : > { %774 = vrcp.f32 %v576_v22  ;;  %v588_v26 = vand.u32 2147483648, %v576_v22  ;;  %v586_v28 = vand.u32 2147483647, %v576_v22  ;;  %vm582_vm8 = vweird.f32 %v576_v22 }
 0x2a6   : > { %v589_v30 = vor.u32 1.1754944e-38, %v588_v26  ;;  %vm587_vm10 = vcmp.eq.f32.partialorder %v586_v28, 8.507059e+37 }
 0x2aa   : > { %v775_v23 = vpop.eup %774 }
 0x2ab   : > { %v578_v24 = vmul.f32 %v775_v23, %v576_v22  ;;  %vm583_vm7 = vweird.f32 %v775_v23 }
 0x2ac   : > { %vm584_vm9 = vmor %vm582_vm8, %vm583_vm7 }
 0x2ad   : > { %v579_v25 = vsub.f32 1.0, %v578_v24 }
 0x2af   : > { %v580_v27 = vmul.f32 %v775_v23, %v579_v25 }
 0x2b1   : > { %v581_v29 = vadd.f32 %v775_v23, %v580_v27 }
 0x2b3   : > { %v585_v31 = vsel %vm584_vm9, %v775_v23, %v581_v29 }
 0x2b4   : > { %v590_v32 = vsel %vm587_vm10, %v589_v30, %v585_v31 }
 0x2b5   : > { %592 = vst.msk [vmem:[%s205_s21] sm:$0x1] %vm211_vm0, %v590_v32 }
 0x2b6   : > { %833 = shalt.err (!%p830_p13)
}
 0x2b7   : > { %704 = dma.vmem_to_hbm [thread:$0]  (%p966_p9), %s605_s23, 16, %s607_s29, %s594_s15  }
 0x2b8 PF: > { %s618_s19 = sand.u32 1, %s868_s12   ;;  %p711_p0 = pnand %p686_p12, %p973_p11 }
 0x2b9   : > { %s619_s7 = scalar_lea.sflag [#allocation6], %s618_s19 }
 0x2ba   : > { %p712_p1 = pneg %p711_p0 }
 0x2bc   : > { %863 = dma.done.wait (%p712_p1), %s619_s7, 16  }
 0x2bd   : > { %865 = vsyncadd (%p712_p1), %s619_s7, 4294967280  ;;  %s19_s17 = sadd.s32 1, %s888_s17   ;;  %s1072_s12 = smov %s872_s13 }
 0x2be   : > { %p16_p2 = scmp.ge.s32.totalorder %s19_s17, 4   ;;  %s1073_s13 = smov %s876_s14 }
 0x2bf   : > { %s1074_s14 = smov %s971_s26  ;;  %s1075_s15 = smov %s884_s16 }
 0x2c0   : > { %s1076_s16 = smov %s1078_s20  ;;  %18 = sbr.rel (!%p16_p2) target bundleno = 6 (0x6), region = 99 }
 0x2c5   :  { %624 = vsyncpa [#allocation5], 1 }
 0x2c6   :  { %626 = vsyncpa [#allocation5 + $0x1], 1 }
 0x2c7   :  { %627 = vsyncpa [#allocation6], 1 }
 0x2c8   :  { %629 = vsyncpa [#allocation6 + $0x1], 1 }

</bundles_post_ra>
